<compile_context>
chip_gen: v7x
topology: tpu7x:2x2x1
jax: 0.10.0
libtpu: 0.0.40
codegen_flags: <defaults>
</compile_context>

<pallas_src>
import functools

import jax
import jax.numpy as jnp
from jax.experimental import pallas as pl
from jax.experimental.pallas import tpu as pltpu


def _nstep_ac_kernel(x_ref, w_ref, g_ref, out_ref, *, n_act, blk):
    """x_ref:[B,OBS]  w_ref:[3*blk,H] packed slab  g_ref:[B,A]  out_ref:[B,3]."""
    batch = x_ref.shape[0]
    ones = jnp.ones((batch, 1), jnp.float32)

    def aug(a):
        # Append the constant-1 column (bias row in the slab) + zero padding so
        # the K dim matches the 8-row-aligned weight block height `blk`.
        pad = blk - (a.shape[1] + 1)
        parts = [a, ones]
        if pad > 0:
            parts.append(jnp.zeros((batch, pad), jnp.float32))
        return jnp.concatenate(parts, axis=1)

    # Shared body: two Linear(+bias-folded) + ReLU layers, f32 MXU accumulation.
    x = x_ref[...]
    h1 = jnp.maximum(
        jnp.dot(aug(x), w_ref[0:blk, :], preferred_element_type=jnp.float32), 0.0)
    h2 = jnp.maximum(
        jnp.dot(aug(h1), w_ref[blk:2 * blk, :], preferred_element_type=jnp.float32),
        0.0)

    # Fused policy+value head (one matmul), then slice.
    head = jnp.dot(aug(h2), w_ref[2 * blk:3 * blk, :],
                   preferred_element_type=jnp.float32)
    logits = head[:, :n_act]                       # [B, A]
    value = head[:, n_act:n_act + 1]               # [B, 1]

    # Stable log-softmax pieces (full log_probs never materialized).
    mx = jnp.max(logits, axis=-1, keepdims=True)                        # [B,1]
    lse = jnp.log(jnp.sum(jnp.exp(logits - mx), axis=-1, keepdims=True))

    # Categorical sample via Gumbel-max (noise precomputed in the wrapper).
    perturbed = logits + g_ref[...]
    col = jax.lax.broadcasted_iota(jnp.int32, logits.shape, 1)          # [B,A]
    pmax = jnp.max(perturbed, axis=-1, keepdims=True)
    action = jnp.min(jnp.where(perturbed == pmax, col, n_act),
                     axis=-1, keepdims=True)                            # [B,1]
    action = jnp.clip(action, 0, n_act - 1)        # NaN-safe, always in range.

    # log_prob of the sampled action: gather its logit, subtract max + lse.
    gathered = jnp.sum(jnp.where(col == action, logits, 0.0),
                       axis=-1, keepdims=True)                          # [B,1]
    log_prob = gathered - mx - lse

    # Single packed output slab [B, 3]:
    #   col 0 = action (exact small ints in f32), col 1 = log_prob, col 2 = value
    out_col = jax.lax.broadcasted_iota(jnp.int32, (batch, 3), 1)
    out_ref[...] = jnp.where(out_col == 0, action.astype(jnp.float32),
                             jnp.where(out_col == 1, log_prob, value))


def make_params(key, obs_dim, hidden, n_act):
    """PyTorch-default-style init; builds the packed (bias-folded) param slab."""
    assert hidden >= n_act + 1, "slab width = hidden must hold the A+1 head cols"

    def linear(k, fan_in, fan_out):
        kw, kb = jax.random.split(k)
        bound = 1.0 / float(fan_in) ** 0.5
        w = jax.random.uniform(kw, (fan_in, fan_out), jnp.float32, -bound, bound)
        b = jax.random.uniform(kb, (fan_out,), jnp.float32, -bound, bound)
        return w, b

    k1, k2, k3, k4 = jax.random.split(key, 4)
    w1, b1 = linear(k1, obs_dim, hidden)
    w2, b2 = linear(k2, hidden, hidden)
    wp, bp = linear(k3, hidden, n_act)
    wv, bv = linear(k4, hidden, 1)

    # Fused policy+value head: [H, A+1].
    wh = jnp.concatenate([wp, wv], axis=1)
    bh = jnp.concatenate([bp, bv], axis=0)

    # One contiguous slab: 3 blocks of `blk` rows x `hidden` cols.
    # Block k: rows [0, fan_in) = weights, row fan_in = bias, rest zero.
    blk = ((max(obs_dim, hidden) + 1 + 7) // 8) * 8   # 8-row aligned block height

    def block(w, b, fan_in):
        m = jnp.zeros((blk, hidden), jnp.float32)
        m = m.at[:fan_in, :w.shape[1]].set(w)
        m = m.at[fan_in, :w.shape[1]].set(b)
        return m

    slab = jnp.concatenate(
        [block(w1, b1, obs_dim), block(w2, b2, hidden), block(wh, bh, hidden)],
        axis=0)                                       # [3*blk, hidden]

    return dict(w1=w1, b1=b1, w2=w2, b2=b2, wh=wh, bh=bh, slab=slab, blk=blk)


@jax.jit
def _nstep_ac_forward_impl(state, slab, gumbel):
    B, obs_dim = state.shape
    n_act = gumbel.shape[1]
    hidden = slab.shape[1]
    blk = slab.shape[0] // 3

    kernel = functools.partial(_nstep_ac_kernel, n_act=n_act, blk=blk)

    cost = pl.CostEstimate(
        flops=6 * B * blk * hidden,
        transcendentals=B * (n_act + 1),
        bytes_accessed=4 * (B * obs_dim + 3 * blk * hidden + B * n_act + B * 3),
    )

    vmem = pl.BlockSpec(memory_space=pltpu.MemorySpace.VMEM)
    packed = pl.pallas_call(
        kernel,
        out_shape=jax.ShapeDtypeStruct((B, 3), jnp.float32),
        in_specs=[vmem, vmem, vmem],
        out_specs=vmem,
        cost_estimate=cost,
    )(state, slab, gumbel)

    # Fused (under jit) with the custom call output.
    action = packed[:, 0].astype(jnp.int32)     # [B]
    log_prob = packed[:, 1]                     # [B]
    value = packed[:, 2:3]                      # [B, 1]
    return action, log_prob, value


def nstep_ac_forward(state, params, key, n_act):
    """NstepAC.forward: returns (action [B] i32, log_prob [B] f32, value [B,1] f32).

    `key` must differ per environment step (Gumbel noise for Categorical.sample).
    For large acting batches, stack more rows per call (B=128+) — wall time is
    ~flat in B at these layer sizes, so launch/DMA overhead amortizes.
    """
    B = state.shape[0]
    gumbel = jax.random.gumbel(key, (B, n_act), dtype=jnp.float32)
    return _nstep_ac_forward_impl(state, params["slab"], gumbel)


if __name__ == "__main__":
    B, OBS, HID, ACT = 8, 32, 32, 8

    root = jax.random.PRNGKey(0)
    k_params, k_state, k_sample = jax.random.split(root, 3)

    params = make_params(k_params, OBS, HID, ACT)
    state = jax.random.normal(k_state, (B, OBS), dtype=jnp.float32)

    action, log_prob, value = nstep_ac_forward(state, params, k_sample, ACT)
    jax.block_until_ready((action, log_prob, value))

    # Shape/dtype contract of the PyTorch forward().
    assert action.shape == (B,) and action.dtype == jnp.int32
    assert log_prob.shape == (B,) and log_prob.dtype == jnp.float32
    assert value.shape == (B, 1) and value.dtype == jnp.float32
    assert bool(jnp.all(action >= 0)) and bool(jnp.all(action < ACT))
    assert bool(jnp.all(log_prob <= 1e-5))

    # Reference check against a plain-JAX forward (same Gumbel noise).
    def _dot(a, b):
        return jnp.dot(a, b, precision=jax.lax.Precision.HIGHEST)

    h1 = jnp.maximum(_dot(state, params["w1"]) + params["b1"], 0.0)
    h2 = jnp.maximum(_dot(h1, params["w2"]) + params["b2"], 0.0)
    head = _dot(h2, params["wh"]) + params["bh"]
    logits_ref, value_ref = head[:, :ACT], head[:, ACT:ACT + 1]
    logp_ref = jax.nn.log_softmax(logits_ref, axis=-1)

    gumbel = jax.random.gumbel(k_sample, (B, ACT), dtype=jnp.float32)
    action_ref = jnp.argmax(logits_ref + gumbel, axis=-1).astype(jnp.int32)

    assert bool(jnp.allclose(value, value_ref, atol=1e-3, rtol=1e-3))
    assert bool(jnp.array_equal(action, action_ref))
    assert bool(jnp.allclose(log_prob, logp_ref[jnp.arange(B), action],
                             atol=1e-3, rtol=1e-3))

    print("KERNEL_OK")
</pallas_src>

<mosaic_0001>
module attributes {stable_mosaic.version = 11 : i64} {
  func.func @_nstep_ac_kernel(%arg0: memref<8x32xf32, #tpu.memory_space<vmem>>, %arg1: memref<120x32xf32, #tpu.memory_space<vmem>>, %arg2: memref<8x8xf32, #tpu.memory_space<vmem>>, %arg3: memref<8x3xf32, #tpu.memory_space<vmem>>) attributes {dimension_semantics = [], scalar_prefetch = 0 : i64, scratch_operands = 0 : i64, tpu.core_type = #tpu.core_type<tc>} {
    %cst = arith.constant 1.000000e+00 : f32
    %0 = vector.broadcast %cst : f32 to vector<8x1xf32>
    %c0 = arith.constant 0 : index
    %c0_0 = arith.constant 0 : index
    %1 = vector.load %arg0[%c0, %c0_0] : memref<8x32xf32, #tpu.memory_space<vmem>>, vector<8x32xf32>
    %cst_1 = arith.constant 0.000000e+00 : f32
    %2 = vector.broadcast %cst_1 : f32 to vector<8x7xf32>
    %3 = tpu.concatenate %1, %0, %2 in 1 : vector<8x32xf32>, vector<8x1xf32>, vector<8x7xf32> -> vector<8x40xf32>
    %c0_2 = arith.constant 0 : index
    %c0_3 = arith.constant 0 : index
    %4 = vector.load %arg1[%c0_2, %c0_3] : memref<120x32xf32, #tpu.memory_space<vmem>>, vector<40x32xf32>
    %cst_4 = arith.constant dense<0.000000e+00> : vector<8x32xf32>
    %5 = tpu.matmul %3, %4, %cst_4 {dimension_numbers = #tpu.dot_dimension_numbers<[1], [0], [0], [1], [0, 0, 1, 1], [], []>} : vector<8x40xf32>, vector<40x32xf32>, vector<8x32xf32> -> vector<8x32xf32>
    %cst_5 = arith.constant 0.000000e+00 : f32
    %6 = vector.broadcast %cst_5 : f32 to vector<8x32xf32>
    %7 = arith.maximumf %5, %6 : vector<8x32xf32>
    %cst_6 = arith.constant 0.000000e+00 : f32
    %8 = vector.broadcast %cst_6 : f32 to vector<8x7xf32>
    %9 = tpu.concatenate %7, %0, %8 in 1 : vector<8x32xf32>, vector<8x1xf32>, vector<8x7xf32> -> vector<8x40xf32>
    %c40 = arith.constant 40 : index
    %c0_7 = arith.constant 0 : index
    %10 = vector.load %arg1[%c40, %c0_7] : memref<120x32xf32, #tpu.memory_space<vmem>>, vector<40x32xf32>
    %cst_8 = arith.constant dense<0.000000e+00> : vector<8x32xf32>
    %11 = tpu.matmul %9, %10, %cst_8 {dimension_numbers = #tpu.dot_dimension_numbers<[1], [0], [0], [1], [0, 0, 1, 1], [], []>} : vector<8x40xf32>, vector<40x32xf32>, vector<8x32xf32> -> vector<8x32xf32>
    %cst_9 = arith.constant 0.000000e+00 : f32
    %12 = vector.broadcast %cst_9 : f32 to vector<8x32xf32>
    %13 = arith.maximumf %11, %12 : vector<8x32xf32>
    %cst_10 = arith.constant 0.000000e+00 : f32
    %14 = vector.broadcast %cst_10 : f32 to vector<8x7xf32>
    %15 = tpu.concatenate %13, %0, %14 in 1 : vector<8x32xf32>, vector<8x1xf32>, vector<8x7xf32> -> vector<8x40xf32>
    %c80 = arith.constant 80 : index
    %c0_11 = arith.constant 0 : index
    %16 = vector.load %arg1[%c80, %c0_11] : memref<120x32xf32, #tpu.memory_space<vmem>>, vector<40x32xf32>
    %cst_12 = arith.constant dense<0.000000e+00> : vector<8x32xf32>
    %17 = tpu.matmul %15, %16, %cst_12 {dimension_numbers = #tpu.dot_dimension_numbers<[1], [0], [0], [1], [0, 0, 1, 1], [], []>} : vector<8x40xf32>, vector<40x32xf32>, vector<8x32xf32> -> vector<8x32xf32>
    %18 = vector.extract_strided_slice %17 {offsets = [0, 0], sizes = [8, 8], strides = [1, 1]} : vector<8x32xf32> to vector<8x8xf32>
    %19 = vector.extract_strided_slice %17 {offsets = [0, 8], sizes = [8, 1], strides = [1, 1]} : vector<8x32xf32> to vector<8x1xf32>
    %cst_13 = arith.constant dense<0xFF800000> : vector<8xf32>
    %20 = vector.multi_reduction <maximumf>, %18, %cst_13 [1] : vector<8x8xf32> to vector<8xf32>
    %21 = vector.shape_cast %20 : vector<8xf32> to vector<8x1xf32>
    %22 = vector.broadcast %21 : vector<8x1xf32> to vector<8x8xf32>
    %23 = arith.subf %18, %22 : vector<8x8xf32>
    %24 = math.exp %23 : vector<8x8xf32>
    %cst_14 = arith.constant dense<0.000000e+00> : vector<8xf32>
    %25 = vector.multi_reduction <add>, %24, %cst_14 [1] : vector<8x8xf32> to vector<8xf32>
    %26 = vector.shape_cast %25 : vector<8xf32> to vector<8x1xf32>
    %27 = math.log %26 : vector<8x1xf32>
    %c0_15 = arith.constant 0 : index
    %c0_16 = arith.constant 0 : index
    %28 = vector.load %arg2[%c0_15, %c0_16] : memref<8x8xf32, #tpu.memory_space<vmem>>, vector<8x8xf32>
    %29 = arith.addf %18, %28 : vector<8x8xf32>
    %30 = tpu.iota {dimensions = array<i32: 1>} : vector<8x8xi32>
    %cst_17 = arith.constant dense<0xFF800000> : vector<8xf32>
    %31 = vector.multi_reduction <maximumf>, %29, %cst_17 [1] : vector<8x8xf32> to vector<8xf32>
    %32 = vector.shape_cast %31 : vector<8xf32> to vector<8x1xf32>
    %33 = vector.broadcast %32 : vector<8x1xf32> to vector<8x8xf32>
    %34 = arith.cmpf oeq, %29, %33 : vector<8x8xf32>
    %c8_i32 = arith.constant 8 : i32
    %35 = vector.broadcast %c8_i32 : i32 to vector<8x8xi32>
    %36 = arith.select %34, %30, %35 : vector<8x8xi1>, vector<8x8xi32>
    %cst_18 = arith.constant dense<2147483647> : vector<8xi32>
    %37 = vector.multi_reduction <minsi>, %36, %cst_18 [1] : vector<8x8xi32> to vector<8xi32>
    %38 = vector.shape_cast %37 : vector<8xi32> to vector<8x1xi32>
    %c0_i32 = arith.constant 0 : i32
    %c7_i32 = arith.constant 7 : i32
    %39 = vector.broadcast %c0_i32 : i32 to vector<8x1xi32>
    %40 = arith.maxsi %39, %38 : vector<8x1xi32>
    %41 = vector.broadcast %c7_i32 : i32 to vector<8x1xi32>
    %42 = arith.minsi %41, %40 : vector<8x1xi32>
    %43 = vector.broadcast %42 : vector<8x1xi32> to vector<8x8xi32>
    %44 = arith.cmpi eq, %30, %43 : vector<8x8xi32>
    %cst_19 = arith.constant 0.000000e+00 : f32
    %45 = vector.broadcast %cst_19 : f32 to vector<8x8xf32>
    %46 = arith.select %44, %18, %45 : vector<8x8xi1>, vector<8x8xf32>
    %cst_20 = arith.constant dense<0.000000e+00> : vector<8xf32>
    %47 = vector.multi_reduction <add>, %46, %cst_20 [1] : vector<8x8xf32> to vector<8xf32>
    %48 = vector.shape_cast %47 : vector<8xf32> to vector<8x1xf32>
    %49 = arith.subf %48, %21 : vector<8x1xf32>
    %50 = arith.subf %49, %27 : vector<8x1xf32>
    %51 = tpu.iota {dimensions = array<i32: 1>} : vector<8x3xi32>
    %c0_i32_21 = arith.constant 0 : i32
    %52 = vector.broadcast %c0_i32_21 : i32 to vector<8x3xi32>
    %53 = arith.cmpi eq, %51, %52 : vector<8x3xi32>
    %54 = arith.sitofp %42 : vector<8x1xi32> to vector<8x1xf32>
    %c1_i32 = arith.constant 1 : i32
    %55 = vector.broadcast %c1_i32 : i32 to vector<8x3xi32>
    %56 = arith.cmpi eq, %51, %55 : vector<8x3xi32>
    %57 = vector.shape_cast %50 : vector<8x1xf32> to vector<8x1xf32>
    %58 = vector.broadcast %57 : vector<8x1xf32> to vector<8x3xf32>
    %59 = vector.shape_cast %19 : vector<8x1xf32> to vector<8x1xf32>
    %60 = vector.broadcast %59 : vector<8x1xf32> to vector<8x3xf32>
    %61 = arith.select %56, %58, %60 : vector<8x3xi1>, vector<8x3xf32>
    %62 = vector.shape_cast %54 : vector<8x1xf32> to vector<8x1xf32>
    %63 = vector.broadcast %62 : vector<8x1xf32> to vector<8x3xf32>
    %64 = arith.select %53, %63, %61 : vector<8x3xi1>, vector<8x3xf32>
    %c0_22 = arith.constant 0 : index
    %c0_23 = arith.constant 0 : index
    %65 = vector.load %arg3[%c0_22, %c0_23] : memref<8x3xf32, #tpu.memory_space<vmem>>, vector<8x3xf32>
    tpu.vector_store %arg3[%c0_22, %c0_23], %64 {strides = array<i32>} : memref<8x3xf32, #tpu.memory_space<vmem>>, vector<8x3xf32>,
    return
  }
}

</mosaic_0001>

<bundles_post_ra>
// kernel: _nstep_ac_forward_impl.1
= control target key start
LH: loop header
LB: loop body
LE: loop exit
PB: predicated region body
PF: predicated region fallthrough
CT: control target
= control target key end

     0   :  { %v410_v0 = vmov 0.0|0.0   ;;  %vm411_vm0 = vmmov 0   ;;  %v412_v4 = vmov 0.0   ;;  %vm15_vm1 = vcmask 261120   ;;  %s505_s1 = inlined_call_operand.vmem [shape: f32[120,32], index: 1, kind: input, shape index: {}]   ;;  %s506_s0 = inlined_call_operand.vmem [shape: f32[8,32], index: 0, kind: input, shape index: {}]   ;;  %s507_s2 = inlined_call_operand.vmem [shape: f32[8,8], index: 2, kind: input, shape index: {}]   ;;  %s508_s3 = inlined_call_operand.vmem [shape: f32[8,3], index: 3, kind: output, shape index: {}]  }
   0x1   :  { %383 = vmatprep.subr.bf16.mxu0 %v410_v0  ;;  %v19_v1 = vld [vmem:[%s505_s1] sm:$0xff]  ;;  %v20_v2 = vld [vmem:[%s505_s1 + $0x8] sm:$0xff]  ;;  %v21_v3 = vld [vmem:[%s505_s1 + $0x10] sm:$0xff]  ;;  %354 = vmatprep.mubr.msk.f32.mxu0 %vm411_vm0, %v412_v4  ;;  %vm17_vm2 = vcmask 269312   ;;  %vm24_vm3 = vcmask 326656   ;;  %vm260_vm4 = vcmask 64512   ;;  %v274_v43 = vlaneseq }
   0x2   :  { %v384_v5 = vpack.c.bf16 %v20_v2, %v19_v1  ;;  %v22_v6 = vld [vmem:[%s505_s1 + $0x18] sm:$0xff]  ;;  %389 = vmatprep.subr.bf16.mxu1 %v410_v0  ;;  %367 = vmatprep.mubr.msk.f32.mxu1 %vm411_vm0, %v412_v4  ;;  %v101_v7 = vld [vmem:[%s505_s1 + $0x28] sm:$0xff]  ;;  %v102_v8 = vld [vmem:[%s505_s1 + $0x30] sm:$0xff]  ;;  %v413_v42 = vmov 8   ;;  %vm317_vm12 = vcmask 23552  }
   0x3   :  { %v387_v9 = vpack.c.bf16 %v22_v6, %v21_v3  ;;  %v14_v10 = vld [vmem:[%s506_s0] sm:$0xff]  ;;  %v390_v11 = vpack.c.bf16 %v102_v8, %v101_v7  ;;  %v103_v15 = vld [vmem:[%s505_s1 + $0x38] sm:$0xff]  ;;  %v105_v18 = vld [vmem:[%s505_s1 + $0x48] sm:$0xff]  ;;  %405 = vset.pattern.permute.xlu0 %v413_v42  ;;  %v275_v45 = vand.u32 127, %v274_v43 }
   0x4   :  { %385 = vmatpush3.bf16.msra.mxu0 %v384_v5  ;;  %v16_v12 = vsel %vm15_vm1, %v14_v10, 1.0  ;;  %v23_v13 = vld [vmem:[%s505_s1 + $0x20] sm:$0xff]  ;;  %v182_v19 = vld [vmem:[%s505_s1 + $0x50] sm:$0xff]  ;;  %v183_v20 = vld [vmem:[%s505_s1 + $0x58] sm:$0xff] }
   0x5   :  { %386 = vmatprep.subr.bf16.mxu0 %v410_v0  ;;  %391 = vmatpush3.bf16.msra.mxu1 %v390_v11  ;;  %v18_v14 = vsel %vm17_vm2, %v16_v12, 0.0  ;;  %v104_v16 = vld [vmem:[%s505_s1 + $0x40] sm:$0xff]  ;;  %v396_v21 = vpack.c.bf16 %v183_v20, %v182_v19  ;;  %v185_v28 = vld [vmem:[%s505_s1 + $0x68] sm:$0xff]  ;;  %v186_v30 = vld [vmem:[%s505_s1 + $0x70] sm:$0xff]  ;;  %vm309_vm10 = vcmp.eq.s32.totalorder %v275_v45, 1  ;;  %vm307_vm11 = vcmp.eq.s32.totalorder %v275_v45, 0 }
   0x6   :  { %392 = vmatprep.subr.bf16.mxu1 %v410_v0  ;;  %v393_v17 = vpack.c.bf16 %v104_v16, %v103_v15  ;;  %v184_v27 = vld [vmem:[%s505_s1 + $0x60] sm:$0xff] }
   0x7   :  { %v399_v29 = vpack.c.bf16 %v185_v28, %v184_v27  ;;  %v272_v36 = vld [vmem:[%s507_s2] sm:$0xff] }
   0x8   :  { %388 = vmatpush3.bf16.msra.mxu0 %v387_v9 }
   0x9   :  { %352 = vmatprep.subr.mxu0 %v412_v4  ;;  %394 = vmatpush3.bf16.msra.mxu1 %v393_v17 }
   0xa   :  { %365 = vmatprep.subr.mxu1 %v412_v4 }
   0xc   :  { %353 = vmatpush3.msra.mxu0 %v23_v13 }
   0xd   :  { %355 = vmatmul.mubr.msk.f32.vlgmr.msra.gmra.mrb[0].mxu0 %vm24_vm3, %v18_v14  ;;  %395 = vmatprep.subr.bf16.mxu0 %v410_v0 }
   0xe   :  { %380 = vmatprep.mubr.msk.f32.mxu0 %vm411_vm0, %v412_v4  ;;  %366 = vmatpush3.msra.mxu1 %v105_v18 }
   0xf   :  { %397 = vmatpush3.bf16.msra.mxu0 %v396_v21 }
  0x10   :  { %398 = vmatprep.subr.bf16.mxu0 %v410_v0 }
  0x13   :  { %400 = vmatpush3.bf16.msra.mxu0 %v399_v29 }
  0x14   :  { %378 = vmatprep.subr.mxu0 %v412_v4 }
  0x17   :  { %379 = vmatpush3.msra.mxu0 %v186_v30 }
  0xe0   :  { %v94_v22 = vpop.f32.mrb[0].mxu0 }
  0xe1   :  { %v98_v23 = vmax.f32 %v94_v22, 0.0  ;;  %v356_v24 = vpop.f32.mrb[1].mxu0 }
  0xe3   :  { %v99_v25 = vsel %vm15_vm1, %v98_v23, 1.0 }
  0xe4   :  { %v100_v26 = vsel %vm17_vm2, %v99_v25, 0.0 }
  0xe5   :  { %368 = vmatmul.mubr.msk.f32.vlgmr.msra.gmra.mrb[0].mxu1 %vm24_vm3, %v100_v26 }
 0x1b8   :  { %v175_v31 = vpop.f32.mrb[0].mxu1 }
 0x1b9   :  { %v179_v32 = vmax.f32 %v175_v31, 0.0  ;;  %v369_v33 = vpop.f32.mrb[1].mxu1 }
 0x1bb   :  { %v180_v34 = vsel %vm15_vm1, %v179_v32, 1.0 }
 0x1bc   :  { %v181_v35 = vsel %vm17_vm2, %v180_v34, 0.0 }
 0x1bd   :  { %381 = vmatmul.mubr.msk.f32.vlgmr.msra.gmra.mrb[2].mxu0 %vm24_vm3, %v181_v35 }
 0x290   :  { %v256_v37 = vpop.f32.mrb[2].mxu0 }
 0x291   :  { %v382_v38 = vpop.f32.mrb[3].mxu0  ;;  %v261_v39 = vsel %vm260_vm4, %v256_v37, -inf  ;;  %v273_v40 = vadd.f32 %v272_v36, %v256_v37 }
 0x292   :  { %262 = vmax.xlane.f32.xlu1 %v261_v39 }
 0x293   :  { %v276_v41 = vsel %vm260_vm4, %v273_v40, -inf }
 0x294   :  { %277 = vmax.xlane.f32.xlu0 %v276_v41 }
 0x31f   :  { %v263_v44 = vpop.xlane.xlu1 %262 }
 0x320   :  { %v264_v46 = vsub.f32 %v256_v37, %v263_v44 }
 0x321   :  { %v278_v47 = vpop.xlane.xlu0 %277 }
 0x322   :  { %v265_v48 = vmul.f32 1.442695, %v264_v46  ;;  %vm279_vm5 = vcmp.eq.f32.partialorder %v273_v40, %v278_v47 }
 0x323   :  { %v280_v49 = vsel %vm279_vm5, %v275_v45, 8 }
 0x324   :  { %406 = vpow2.f32 %v265_v48  ;;  %v281_v50 = vsel %vm260_vm4, %v280_v49, 2147483647 }
 0x325   :  { %v283_v51 = vshra.s32 %v281_v50, 16  ;;  %v282_v55 = vand.u32 65535, %v281_v50 }
 0x327   :  { %v285_v52 = vcvt.s32.f32 %v283_v51  ;;  %v284_v57 = vcvt.s32.f32 %v282_v55 }
 0x329   :  { %286 = vmin.xlane.f32.xlu0 %v285_v52 }
 0x32e   :  { %v407_v53 = vpop.eup %406 }
 0x32f   :  { %v267_v54 = vsel %vm260_vm4, %v407_v53, 0.0 }
 0x330   :  { %268 = vadd.xlane.f32.xlu0 %v267_v54 }
 0x346   :  { %312 = vperm.xlu0 %405, %v256_v37  }
 0x3b6   :  { %v287_v56 = vpop.xlane.xlu0 %286 }
 0x3b7   :  { %vm288_vm6 = vcmp.eq.f32.partialorder %v285_v52, %v287_v56  ;;  %v293_v59 = vcvt.f32.s32 %v287_v56 }
 0x3b8   :  { %v289_v58 = vsel %vm288_vm6, %v284_v57, inf }
 0x3b9   :  { %290 = vmin.xlane.f32.xlu1 %v289_v58  ;;  %v294_v61 = vshll.u32 %v293_v59, 16 }
 0x3bd   :  { %v269_v4 = vpop.xlane.xlu0 %268 }
 0x3be   :  { %408 = vlog2.f32 %v269_v4 }
 0x3c5   :  { %v313_v10 = vpop.permute.xlu0 %312 }
 0x3c8   :  { %v409_v5 = vpop.eup %408 }
 0x3c9   :  { %v271_v7 = vmul.f32 0.6931472, %v409_v5 }
 0x446   :  { %v291_v60 = vpop.xlane.xlu1 %290 }
 0x447   :  { %v292_v62 = vcvt.f32.s32 %v291_v60 }
 0x449   :  { %v295_v63 = vadd.s32 %v294_v61, %v292_v62 }
 0x44b   :  { %vm296_vm7 = vcmp.gt.s32.totalorder %v295_v63, 0 }
 0x44c   :  { %v297_v0 = vsel %vm296_vm7, %v295_v63, 0 }
 0x44d   :  { %vm298_vm8 = vcmp.lt.s32.totalorder %v297_v0, 7 }
 0x44e   :  { %v299_v1 = vsel %vm298_vm8, %v297_v0, 7 }
 0x44f   :  { %vm300_vm9 = vcmp.eq.s32.totalorder %v275_v45, %v299_v1  ;;  %v308_v11 = vcvt.s32.f32 %v299_v1 }
 0x450   :  { %v301_v2 = vsel %vm300_vm9, %v256_v37, 0.0 }
 0x451   :  { %v302_v3 = vsel %vm260_vm4, %v301_v2, 0.0 }
 0x452   :  { %303 = vadd.xlane.f32.xlu1 %v302_v3 }
 0x4df   :  { %v304_v6 = vpop.xlane.xlu1 %303 }
 0x4e0   :  { %v305_v8 = vsub.f32 %v304_v6, %v263_v44 }
 0x4e2   :  { %v306_v9 = vsub.f32 %v305_v8, %v271_v7 }
 0x4e4   :  { %v315_v12 = vsel %vm309_vm10, %v306_v9, %v313_v10 }
 0x4e5   :  { %v316_v13 = vsel %vm307_vm11, %v308_v11, %v315_v12 }
 0x4e6   :  { %318 = vst.msk [vmem:[%s508_s3] sm:$0xff] %vm317_vm12, %v316_v13 }

</bundles_post_ra>
